<compile_context>
chip_gen: v7x
topology: tpu7x:2x2x1
jax: 0.10.0
libtpu: 0.0.40
codegen_flags: <defaults>
</compile_context>

<pallas_src>
import functools
import math

import jax
import jax.numpy as jnp
from jax import lax
from jax.experimental import pallas as pl
from jax.experimental.pallas import tpu as pltpu

EPS = 1e-6
NEG_INF = -1e9      # additive mask bias (finite -> no NaNs in online softmax)
M_INIT = -1e30      # init value for the running max


def _layer_norm(z, a, b, d):
    # annotated-transformer LayerNorm: unbiased std, eps added to the std.
    mean = jnp.mean(z, axis=-1, keepdims=True)
    var = jnp.sum((z - mean) ** 2, axis=-1, keepdims=True) * (1.0 / (d - 1))
    return a * (z - mean) / (jnp.sqrt(var) + EPS) + b


@functools.lru_cache(maxsize=None)
def _single_buffer_ok():
    """Probe once whether pipeline_mode=pl.Buffered(1) compiles; cache result."""
    if not hasattr(pl, "Buffered"):
        return False
    try:
        def probe(x_ref, o_ref):
            o_ref[...] = x_ref[...] + 1.0

        fn = pl.pallas_call(
            probe,
            out_shape=jax.ShapeDtypeStruct((16, 128), jnp.float32),
            grid=(2,),
            in_specs=[pl.BlockSpec((8, 128), lambda i: (0, 0),
                                   pipeline_mode=pl.Buffered(1))],
            out_specs=pl.BlockSpec((8, 128), lambda i: (i, 0)),
        )
        jax.jit(fn).lower(jax.ShapeDtypeStruct((16, 128), jnp.float32)).compile()
        return True
    except Exception:  # environment dependent: degrade to double-buffered weights
        return False


def _pick_tile(s, prefer, quantum):
    """Largest multiple of `quantum` dividing s, capped at `prefer`; else s."""
    t = min(prefer, s)
    t -= t % quantum
    while t >= quantum:
        if s % t == 0:
            return t
        t -= quantum
    # TODO(synk): sequence lengths not divisible by the tile quantum fall back to
    # one full-length tile; a padded + masked tail tile would bound VMEM for long
    # ragged sequences.
    return s


def _vmem_limit(est_bytes):
    # 2x margin + headroom, clamped to a range valid on v5e/v6e (128 MiB VMEM)
    # and v7x (64 MiB VMEM).
    return int(min(max(2 * est_bytes + (8 << 20), 32 << 20), 64 << 20))


# --------------------- kernel 1: LN1 + Q/K/V projection ---------------------
def _qkv_kernel(x_ref, ln_a_ref, ln_b_ref, wq_ref, bq_ref, wk_ref, bk_ref,
                wv_ref, bv_ref, q_ref, k_ref, v_ref, *, scale):
    d = x_ref.shape[-1]
    xn = _layer_norm(x_ref[0], ln_a_ref[0], ln_b_ref[0], d).astype(jnp.bfloat16)
    q = jnp.dot(xn, wq_ref[...], preferred_element_type=jnp.float32) + bq_ref[0]
    k = jnp.dot(xn, wk_ref[...], preferred_element_type=jnp.float32) + bk_ref[0]
    v = jnp.dot(xn, wv_ref[...], preferred_element_type=jnp.float32) + bv_ref[0]
    q_ref[0] = (q * scale).astype(q_ref.dtype)     # 1/sqrt(dk) folded into Q
    k_ref[0] = k.astype(k_ref.dtype)
    v_ref[0] = v.astype(v_ref.dtype)


# ------ kernel 2: flash attention + output proj + residuals + feed-forward ------
def _make_attn_ffn_kernel(*, n_heads, tq, tk, causal):
    bf16 = jnp.bfloat16

    def kernel(*refs):
        if causal:
            (x_ref, q_ref, k_ref, v_ref,
             wo_ref, bo_ref, ln2_a_ref, ln2_b_ref,
             w1_ref, b1_ref, w2_ref, b2_ref,
             out_ref, m_scr, l_scr, acc_scr) = refs
            mask_ref = None
        else:
            (x_ref, q_ref, k_ref, v_ref, mask_ref,
             wo_ref, bo_ref, ln2_a_ref, ln2_b_ref,
             w1_ref, b1_ref, w2_ref, b2_ref,
             out_ref, m_scr, l_scr, acc_scr) = refs

        kv = pl.program_id(2)
        n_kv = pl.num_programs(2)
        d = x_ref.shape[-1]
        dk = d // n_heads

        # ---- reset online-softmax state at the first key/value tile ----
        @pl.when(kv == 0)
        def _():
            m_scr[...] = jnp.full(m_scr.shape, M_INIT, m_scr.dtype)
            l_scr[...] = jnp.zeros(l_scr.shape, l_scr.dtype)
            acc_scr[...] = jnp.zeros(acc_scr.shape, acc_scr.dtype)

        # ---- additive mask bias for this (query-tile, key-tile) pair ----
        if causal:
            qi = pl.program_id(1)
            rows = qi * tq + lax.broadcasted_iota(jnp.int32, (tq, tk), 0)
            cols = kv * tk + lax.broadcasted_iota(jnp.int32, (tq, tk), 1)
            bias = jnp.where(rows >= cols, 0.0, NEG_INF).astype(jnp.float32)
        else:
            bias = jnp.where(mask_ref[0] == 0, NEG_INF, 0.0).astype(jnp.float32)

        q_t = q_ref[0]     # [tq, D] bf16, already scaled by 1/sqrt(dk)
        k_t = k_ref[0]     # [tk, D] bf16
        v_t = v_ref[0]     # [tk, D] bf16

        # ---- per-head flash update (D stays the lane dim; no head reshape) ----
        for h in range(n_heads):
            sl = slice(h * dk, (h + 1) * dk)
            s_h = lax.dot_general(q_t[:, sl], k_t[:, sl],
                                  (((1,), (1,)), ((), ())),
                                  preferred_element_type=jnp.float32) + bias
            m_prev = m_scr[:, h:h + 1]
            m_new = jnp.maximum(m_prev, jnp.max(s_h, axis=-1, keepdims=True))
            alpha = jnp.exp(m_prev - m_new)
            p_h = jnp.exp(s_h - m_new)
            l_scr[:, h:h + 1] = alpha * l_scr[:, h:h + 1] + jnp.sum(
                p_h, axis=-1, keepdims=True)
            acc_scr[:, sl] = alpha * acc_scr[:, sl] + jnp.dot(
                p_h.astype(bf16), v_t[:, sl], preferred_element_type=jnp.float32)
            m_scr[:, h:h + 1] = m_new

        # ---- last key tile: normalize, project, residuals, feed-forward ----
        @pl.when(kv == n_kv - 1)
        def _():
            # deferred softmax normalization: one ctx * (1/l) multiply per head
            ctx = jnp.concatenate(
                [acc_scr[:, h * dk:(h + 1) * dk]
                 * pl.reciprocal(l_scr[:, h:h + 1], approx=True)
                 for h in range(n_heads)], axis=-1)
            attn = jnp.dot(ctx.astype(bf16), wo_ref[...],
                           preferred_element_type=jnp.float32) + bo_ref[0]
            x_res = x_ref[0] + attn                              # residual 1

            xn2 = _layer_norm(x_res, ln2_a_ref[0], ln2_b_ref[0], d)
            h1 = jnp.dot(xn2.astype(bf16), w1_ref[...],
                         preferred_element_type=jnp.float32) + b1_ref[0]
            h1 = jnp.maximum(h1, 0.0)
            ff = jnp.dot(h1.astype(bf16), w2_ref[...],
                         preferred_element_type=jnp.float32) + b2_ref[0]
            out_ref[0] = (x_res + ff).astype(out_ref.dtype)      # residual 2

    return kernel


def decoder_layer(x, mask, params, *, n_heads, tq=None, tk=None):
    """x: [B,S,D] f32; mask: [B,S,S] (1=attend, 0=masked) or None (causal)."""
    B, S, D = x.shape
    d_ff = params["w1"].shape[1]
    assert D % n_heads == 0
    dk = D // n_heads
    causal = mask is None
    bf16 = jnp.bfloat16
    f32b, bf16b = 4, 2
    single_buf = _single_buffer_ok()

    # Tile quanta are conservative for the packed block dtypes (bf16 q/k/v,
    # int8 mask); tq=256 feeds v6e/v7x's 256-wide MXU once S is large enough.
    if tq is None:
        tq = _pick_tile(S, 256, 32)
    if tk is None:
        tk = _pick_tile(S, 512, 32 if causal else 128)
    if S % tq or (tq != S and tq % 32):
        tq = S
    if S % tk or (tk != S and (tk % 32 or (not causal and tk % 128))):
        tk = S
    n_q, n_kv = S // tq, S // tk

    # bf16 copies of MXU weight operands (halves weight DMA); biases / LN stay f32.
    wq, wk, wv, wo, w1, w2 = (params[n].astype(bf16)
                              for n in ("wq", "wk", "wv", "wo", "w1", "w2"))

    def wspec(shape):
        idx = lambda *_: (0,) * len(shape)        # grid-invariant block
        if single_buf:
            return pl.BlockSpec(shape, idx, pipeline_mode=pl.Buffered(1))
        return pl.BlockSpec(shape, idx)

    # ---------------- kernel 1: LN1 + Q/K/V projection ----------------
    tr = _pick_tile(S, 256, 32)
    proj_est = (2 * tr * D * f32b + 6 * tr * D * bf16b + 4 * tr * D * f32b
                + (3 * D * D * bf16b + 5 * D * f32b) * (1 if single_buf else 2))
    qkv_call = pl.pallas_call(
        functools.partial(_qkv_kernel, scale=1.0 / math.sqrt(dk)),
        out_shape=tuple(jax.ShapeDtypeStruct((B, S, D), bf16) for _ in range(3)),
        grid_spec=pltpu.PrefetchScalarGridSpec(
            num_scalar_prefetch=0,
            grid=(B, S // tr),
            in_specs=[
                pl.BlockSpec((1, tr, D), lambda b, r: (b, r, 0)),   # x rows
                wspec((1, D)), wspec((1, D)),                        # ln1 a, b
                wspec((D, D)), wspec((1, D)),                        # wq, bq
                wspec((D, D)), wspec((1, D)),                        # wk, bk
                wspec((D, D)), wspec((1, D)),                        # wv, bv
            ],
            out_specs=[pl.BlockSpec((1, tr, D), lambda b, r: (b, r, 0))
                       for _ in range(3)],
        ),
        compiler_params=pltpu.CompilerParams(
            dimension_semantics=("parallel", "parallel"),
            vmem_limit_bytes=_vmem_limit(proj_est)),
    )
    q, k, v = qkv_call(x, params["ln1_a"], params["ln1_b"],
                       wq, params["bq"], wk, params["bk"], wv, params["bv"])

    # -------- kernel 2: flash attention + output proj + residual + FFN --------
    attn_w_bytes = (D * D + 2 * D * d_ff) * bf16b + (4 * D + d_ff) * f32b
    est = (2 * tq * D * f32b                      # x block (double buffered)
           + 2 * tq * D * bf16b                   # q block
           + 4 * tk * D * bf16b                   # k, v blocks
           + (0 if causal else 2 * tq * tk)       # int8 mask block
           + 2 * tq * D * f32b                    # out block
           + attn_w_bytes * (1 if single_buf else 2)
           + tq * D * f32b + 2 * tq * 128 * f32b  # acc + m/l scratch (lane-padded)
           + 4 * tq * tk * f32b + tq * d_ff * f32b)   # in-flight temporaries

    in_specs = [
        pl.BlockSpec((1, tq, D), lambda b, qi, kv: (b, qi, 0)),   # x (residual)
        pl.BlockSpec((1, tq, D), lambda b, qi, kv: (b, qi, 0)),   # q
        pl.BlockSpec((1, tk, D), lambda b, qi, kv: (b, kv, 0)),   # k
        pl.BlockSpec((1, tk, D), lambda b, qi, kv: (b, kv, 0)),   # v
    ]
    operands = [x, q, k, v]
    if not causal:
        in_specs.append(pl.BlockSpec((1, tq, tk), lambda b, qi, kv: (b, qi, kv)))
        operands.append(mask.astype(jnp.int8))    # 4x less mask HBM->VMEM traffic
    in_specs += [
        wspec((D, D)), wspec((1, D)),             # wo, bo
        wspec((1, D)), wspec((1, D)),             # ln2 a, b
        wspec((D, d_ff)), wspec((1, d_ff)),       # w1, b1
        wspec((d_ff, D)), wspec((1, D)),          # w2, b2
    ]
    operands += [wo, params["bo"], params["ln2_a"], params["ln2_b"],
                 w1, params["b1"], w2, params["b2"]]

    attn_call = pl.pallas_call(
        _make_attn_ffn_kernel(n_heads=n_heads, tq=tq, tk=tk, causal=causal),
        out_shape=jax.ShapeDtypeStruct((B, S, D), x.dtype),
        grid_spec=pltpu.PrefetchScalarGridSpec(
            num_scalar_prefetch=0,
            grid=(B, n_q, n_kv),
            in_specs=in_specs,
            out_specs=pl.BlockSpec((1, tq, D), lambda b, qi, kv: (b, qi, 0)),
            scratch_shapes=[
                pltpu.VMEM((tq, n_heads), jnp.float32),   # running max per head
                pltpu.VMEM((tq, n_heads), jnp.float32),   # running sum per head
                pltpu.VMEM((tq, D), jnp.float32),         # unnormalized context
            ],
        ),
        compiler_params=pltpu.CompilerParams(
            dimension_semantics=("parallel", "parallel", "arbitrary"),
            vmem_limit_bytes=_vmem_limit(est)),
    )
    return attn_call(*operands)


def _reference(x, mask, p, n_heads):
    """Pure-JAX f32 reference of the same forward pass (for validation)."""
    B, S, D = x.shape
    dk = D // n_heads

    def ln(z, a, b):
        mean = jnp.mean(z, -1, keepdims=True)
        var = jnp.sum((z - mean) ** 2, -1, keepdims=True) / (D - 1)
        return a * (z - mean) / (jnp.sqrt(var) + EPS) + b

    xn = ln(x, p["ln1_a"], p["ln1_b"])
    q = (xn @ p["wq"] + p["bq"]).reshape(B, S, n_heads, dk).transpose(0, 2, 1, 3)
    k = (xn @ p["wk"] + p["bk"]).reshape(B, S, n_heads, dk).transpose(0, 2, 1, 3)
    v = (xn @ p["wv"] + p["bv"]).reshape(B, S, n_heads, dk).transpose(0, 2, 1, 3)
    s = jnp.einsum("bhqd,bhkd->bhqk", q, k) / math.sqrt(dk)
    s = jnp.where(mask[:, None, :, :] == 0, -1e9, s)
    a = jax.nn.softmax(s, axis=-1)
    ctx = jnp.einsum("bhqk,bhkd->bhqd", a, v).transpose(0, 2, 1, 3).reshape(B, S, D)
    x = x + ctx @ p["wo"] + p["bo"]
    xn2 = ln(x, p["ln2_a"], p["ln2_b"])
    ff = jnp.maximum(xn2 @ p["w1"] + p["b1"], 0.0) @ p["w2"] + p["b2"]
    return x + ff


if __name__ == "__main__":
    B, S, D = 2, 64, 32       # batch, seq, d_model (size)
    H, D_FF = 4, 64           # heads, feed-forward hidden

    keys = jax.random.split(jax.random.PRNGKey(0), 14)

    def w(kk, shape, scale=0.1):
        return (scale * jax.random.normal(kk, shape)).astype(jnp.float32)

    params = {
        "ln1_a": jnp.ones((1, D), jnp.float32),
        "ln1_b": jnp.zeros((1, D), jnp.float32),
        "wq": w(keys[0], (D, D)), "bq": w(keys[1], (1, D)),
        "wk": w(keys[2], (D, D)), "bk": w(keys[3], (1, D)),
        "wv": w(keys[4], (D, D)), "bv": w(keys[5], (1, D)),
        "wo": w(keys[6], (D, D)), "bo": w(keys[7], (1, D)),
        "ln2_a": jnp.ones((1, D), jnp.float32),
        "ln2_b": jnp.zeros((1, D), jnp.float32),
        "w1": w(keys[8], (D, D_FF)), "b1": w(keys[9], (1, D_FF)),
        "w2": w(keys[10], (D_FF, D)), "b2": w(keys[11], (1, D)),
    }

    x = jax.random.normal(keys[12], (B, S, D), jnp.float32)
    # causal self-attention mask (subsequent_mask), broadcast over heads
    mask = jnp.tril(jnp.ones((S, S), jnp.int32))[None].repeat(B, axis=0)

    ref = _reference(x, mask, params, H)

    # explicit-mask path: 2 query tiles, int8 mask block, single kv tile
    out_masked = decoder_layer(x, mask, params, n_heads=H, tq=32)
    # causal path: in-kernel mask, 2 query tiles x 2 key tiles (online softmax)
    out_causal = decoder_layer(x, None, params, n_heads=H, tq=32, tk=32)
    jax.block_until_ready((out_masked, out_causal))

    assert out_masked.shape == (B, S, D)
    # bf16 MXU operands + approx softmax reciprocal -> bf16-level tolerance
    assert jnp.allclose(out_masked, ref, atol=3e-2, rtol=3e-2), "masked mismatch"
    assert jnp.allclose(out_causal, ref, atol=3e-2, rtol=3e-2), "causal mismatch"

    # TODO(synk): dropout is identity (eval mode); src_attn / sublayer[1] are
    # unused by this module's forward and therefore not implemented.
    print("KERNEL_OK")
</pallas_src>

<mosaic_0001>
module attributes {stable_mosaic.version = 11 : i64} {
  func.func @_qkv_kernel(%arg0: i32, %arg1: i32, %arg2: memref<1x64x32xf32, #tpu.memory_space<vmem>>, %arg3: memref<1x32xf32, #tpu.memory_space<vmem>>, %arg4: memref<1x32xf32, #tpu.memory_space<vmem>>, %arg5: memref<32x32xbf16, #tpu.memory_space<vmem>>, %arg6: memref<1x32xf32, #tpu.memory_space<vmem>>, %arg7: memref<32x32xbf16, #tpu.memory_space<vmem>>, %arg8: memref<1x32xf32, #tpu.memory_space<vmem>>, %arg9: memref<32x32xbf16, #tpu.memory_space<vmem>>, %arg10: memref<1x32xf32, #tpu.memory_space<vmem>>, %arg11: memref<1x64x32xbf16, #tpu.memory_space<vmem>>, %arg12: memref<1x64x32xbf16, #tpu.memory_space<vmem>>, %arg13: memref<1x64x32xbf16, #tpu.memory_space<vmem>>) attributes {dimension_semantics = [#tpu.dimension_semantics<parallel>, #tpu.dimension_semantics<parallel>], iteration_bounds = array<i64: 2, 1>, scalar_prefetch = 0 : i64, scratch_operands = 0 : i64, tpu.core_type = #tpu.core_type<tc>, window_params = [{transform_indices = @transform_0, window_bounds = array<i64: 1, 64, 32>}, {pipeline_mode = #tpu.pipeline_mode<synchronous>, transform_indices = @transform_1, window_bounds = array<i64: 1, 32>}, {pipeline_mode = #tpu.pipeline_mode<synchronous>, transform_indices = @transform_2, window_bounds = array<i64: 1, 32>}, {pipeline_mode = #tpu.pipeline_mode<synchronous>, transform_indices = @transform_3, window_bounds = array<i64: 32, 32>}, {pipeline_mode = #tpu.pipeline_mode<synchronous>, transform_indices = @transform_4, window_bounds = array<i64: 1, 32>}, {pipeline_mode = #tpu.pipeline_mode<synchronous>, transform_indices = @transform_5, window_bounds = array<i64: 32, 32>}, {pipeline_mode = #tpu.pipeline_mode<synchronous>, transform_indices = @transform_6, window_bounds = array<i64: 1, 32>}, {pipeline_mode = #tpu.pipeline_mode<synchronous>, transform_indices = @transform_7, window_bounds = array<i64: 32, 32>}, {pipeline_mode = #tpu.pipeline_mode<synchronous>, transform_indices = @transform_8, window_bounds = array<i64: 1, 32>}, {transform_indices = @transform_9, window_bounds = array<i64: 1, 64, 32>}, {transform_indices = @transform_10, window_bounds = array<i64: 1, 64, 32>}, {transform_indices = @transform_11, window_bounds = array<i64: 1, 64, 32>}]} {
    %c0 = arith.constant 0 : index
    %c0_0 = arith.constant 0 : index
    %c0_1 = arith.constant 0 : index
    %0 = vector.load %arg2[%c0, %c0_0, %c0_1] : memref<1x64x32xf32, #tpu.memory_space<vmem>>, vector<1x64x32xf32>
    %1 = vector.shape_cast %0 : vector<1x64x32xf32> to vector<64x32xf32>
    %c0_2 = arith.constant 0 : index
    %c0_3 = arith.constant 0 : index
    %2 = vector.load %arg3[%c0_2, %c0_3] : memref<1x32xf32, #tpu.memory_space<vmem>>, vector<1x32xf32>
    %3 = vector.shape_cast %2 : vector<1x32xf32> to vector<32xf32>
    %c0_4 = arith.constant 0 : index
    %c0_5 = arith.constant 0 : index
    %4 = vector.load %arg4[%c0_4, %c0_5] : memref<1x32xf32, #tpu.memory_space<vmem>>, vector<1x32xf32>
    %5 = vector.shape_cast %4 : vector<1x32xf32> to vector<32xf32>
    %cst = arith.constant dense<0.000000e+00> : vector<64xf32>
    %6 = vector.multi_reduction <add>, %1, %cst [1] : vector<64x32xf32> to vector<64xf32>
    %7 = vector.shape_cast %6 : vector<64xf32> to vector<64x1xf32>
    %cst_6 = arith.constant 3.200000e+01 : f32
    %8 = vector.broadcast %cst_6 : f32 to vector<64x1xf32>
    %9 = arith.divf %7, %8 : vector<64x1xf32>
    %10 = vector.broadcast %9 : vector<64x1xf32> to vector<64x32xf32>
    %11 = arith.subf %1, %10 : vector<64x32xf32>
    %12 = arith.mulf %11, %11 : vector<64x32xf32>
    %cst_7 = arith.constant dense<0.000000e+00> : vector<64xf32>
    %13 = vector.multi_reduction <add>, %12, %cst_7 [1] : vector<64x32xf32> to vector<64xf32>
    %14 = vector.shape_cast %13 : vector<64xf32> to vector<64x1xf32>
    %cst_8 = arith.constant 0.0322580636 : f32
    %15 = vector.broadcast %cst_8 : f32 to vector<64x1xf32>
    %16 = arith.mulf %14, %15 : vector<64x1xf32>
    %17 = vector.broadcast %9 : vector<64x1xf32> to vector<64x32xf32>
    %18 = arith.subf %1, %17 : vector<64x32xf32>
    %19 = vector.shape_cast %3 : vector<32xf32> to vector<1x32xf32>
    %20 = vector.broadcast %19 : vector<1x32xf32> to vector<64x32xf32>
    %21 = arith.mulf %20, %18 : vector<64x32xf32>
    %22 = math.sqrt %16 : vector<64x1xf32>
    %cst_9 = arith.constant 9.99999997E-7 : f32
    %23 = vector.broadcast %cst_9 : f32 to vector<64x1xf32>
    %24 = arith.addf %22, %23 : vector<64x1xf32>
    %25 = vector.broadcast %24 : vector<64x1xf32> to vector<64x32xf32>
    %26 = arith.divf %21, %25 : vector<64x32xf32>
    %27 = vector.shape_cast %5 : vector<32xf32> to vector<1x32xf32>
    %28 = vector.broadcast %27 : vector<1x32xf32> to vector<64x32xf32>
    %29 = arith.addf %26, %28 : vector<64x32xf32>
    %30 = arith.truncf %29 : vector<64x32xf32> to vector<64x32xbf16>
    %c0_10 = arith.constant 0 : index
    %c0_11 = arith.constant 0 : index
    %31 = vector.load %arg5[%c0_10, %c0_11] : memref<32x32xbf16, #tpu.memory_space<vmem>>, vector<32x32xbf16>
    %cst_12 = arith.constant dense<0.000000e+00> : vector<64x32xf32>
    %32 = tpu.matmul %30, %31, %cst_12 {dimension_numbers = #tpu.dot_dimension_numbers<[1], [0], [0], [1], [0, 0, 1, 1], [], []>} : vector<64x32xbf16>, vector<32x32xbf16>, vector<64x32xf32> -> vector<64x32xf32>
    %c0_13 = arith.constant 0 : index
    %c0_14 = arith.constant 0 : index
    %33 = vector.load %arg6[%c0_13, %c0_14] : memref<1x32xf32, #tpu.memory_space<vmem>>, vector<1x32xf32>
    %34 = vector.shape_cast %33 : vector<1x32xf32> to vector<32xf32>
    %35 = vector.shape_cast %34 : vector<32xf32> to vector<1x32xf32>
    %36 = vector.broadcast %35 : vector<1x32xf32> to vector<64x32xf32>
    %37 = arith.addf %32, %36 : vector<64x32xf32>
    %c0_15 = arith.constant 0 : index
    %c0_16 = arith.constant 0 : index
    %38 = vector.load %arg7[%c0_15, %c0_16] : memref<32x32xbf16, #tpu.memory_space<vmem>>, vector<32x32xbf16>
    %cst_17 = arith.constant dense<0.000000e+00> : vector<64x32xf32>
    %39 = tpu.matmul %30, %38, %cst_17 {dimension_numbers = #tpu.dot_dimension_numbers<[1], [0], [0], [1], [0, 0, 1, 1], [], []>} : vector<64x32xbf16>, vector<32x32xbf16>, vector<64x32xf32> -> vector<64x32xf32>
    %c0_18 = arith.constant 0 : index
    %c0_19 = arith.constant 0 : index
    %40 = vector.load %arg8[%c0_18, %c0_19] : memref<1x32xf32, #tpu.memory_space<vmem>>, vector<1x32xf32>
    %41 = vector.shape_cast %40 : vector<1x32xf32> to vector<32xf32>
    %42 = vector.shape_cast %41 : vector<32xf32> to vector<1x32xf32>
    %43 = vector.broadcast %42 : vector<1x32xf32> to vector<64x32xf32>
    %44 = arith.addf %39, %43 : vector<64x32xf32>
    %c0_20 = arith.constant 0 : index
    %c0_21 = arith.constant 0 : index
    %45 = vector.load %arg9[%c0_20, %c0_21] : memref<32x32xbf16, #tpu.memory_space<vmem>>, vector<32x32xbf16>
    %cst_22 = arith.constant dense<0.000000e+00> : vector<64x32xf32>
    %46 = tpu.matmul %30, %45, %cst_22 {dimension_numbers = #tpu.dot_dimension_numbers<[1], [0], [0], [1], [0, 0, 1, 1], [], []>} : vector<64x32xbf16>, vector<32x32xbf16>, vector<64x32xf32> -> vector<64x32xf32>
    %c0_23 = arith.constant 0 : index
    %c0_24 = arith.constant 0 : index
    %47 = vector.load %arg10[%c0_23, %c0_24] : memref<1x32xf32, #tpu.memory_space<vmem>>, vector<1x32xf32>
    %48 = vector.shape_cast %47 : vector<1x32xf32> to vector<32xf32>
    %49 = vector.shape_cast %48 : vector<32xf32> to vector<1x32xf32>
    %50 = vector.broadcast %49 : vector<1x32xf32> to vector<64x32xf32>
    %51 = arith.addf %46, %50 : vector<64x32xf32>
    %cst_25 = arith.constant 0.353553385 : f32
    %52 = vector.broadcast %cst_25 : f32 to vector<64x32xf32>
    %53 = arith.mulf %37, %52 : vector<64x32xf32>
    %54 = arith.truncf %53 : vector<64x32xf32> to vector<64x32xbf16>
    %c0_26 = arith.constant 0 : index
    %c0_27 = arith.constant 0 : index
    %c0_28 = arith.constant 0 : index
    %55 = vector.load %arg11[%c0_26, %c0_27, %c0_28] : memref<1x64x32xbf16, #tpu.memory_space<vmem>>, vector<1x64x32xbf16>
    %56 = vector.shape_cast %55 : vector<1x64x32xbf16> to vector<64x32xbf16>
    %57 = vector.shape_cast %54 : vector<64x32xbf16> to vector<1x64x32xbf16>
    tpu.vector_store %arg11[%c0_26, %c0_27, %c0_28], %57 {strides = array<i32>} : memref<1x64x32xbf16, #tpu.memory_space<vmem>>, vector<1x64x32xbf16>,
    %58 = arith.truncf %44 : vector<64x32xf32> to vector<64x32xbf16>
    %c0_29 = arith.constant 0 : index
    %c0_30 = arith.constant 0 : index
    %c0_31 = arith.constant 0 : index
    %59 = vector.load %arg12[%c0_29, %c0_30, %c0_31] : memref<1x64x32xbf16, #tpu.memory_space<vmem>>, vector<1x64x32xbf16>
    %60 = vector.shape_cast %59 : vector<1x64x32xbf16> to vector<64x32xbf16>
    %61 = vector.shape_cast %58 : vector<64x32xbf16> to vector<1x64x32xbf16>
    tpu.vector_store %arg12[%c0_29, %c0_30, %c0_31], %61 {strides = array<i32>} : memref<1x64x32xbf16, #tpu.memory_space<vmem>>, vector<1x64x32xbf16>,
    %62 = arith.truncf %51 : vector<64x32xf32> to vector<64x32xbf16>
    %c0_32 = arith.constant 0 : index
    %c0_33 = arith.constant 0 : index
    %c0_34 = arith.constant 0 : index
    %63 = vector.load %arg13[%c0_32, %c0_33, %c0_34] : memref<1x64x32xbf16, #tpu.memory_space<vmem>>, vector<1x64x32xbf16>
    %64 = vector.shape_cast %63 : vector<1x64x32xbf16> to vector<64x32xbf16>
    %65 = vector.shape_cast %62 : vector<64x32xbf16> to vector<1x64x32xbf16>
    tpu.vector_store %arg13[%c0_32, %c0_33, %c0_34], %65 {strides = array<i32>} : memref<1x64x32xbf16, #tpu.memory_space<vmem>>, vector<1x64x32xbf16>,
    return
  }
  func.func @transform_0(%arg0: i32, %arg1: i32) -> (i32, i32, i32) {
    %c0_i32 = arith.constant 0 : i32
    %c0_i32_0 = arith.constant 0 : i32
    return %arg0, %arg1, %c0_i32 : i32, i32, i32
  }
  func.func @transform_1(%arg0: i32, %arg1: i32) -> (i32, i32) {
    %c0_i32 = arith.constant 0 : i32
    %c0_i32_0 = arith.constant 0 : i32
    %c0_i32_1 = arith.constant 0 : i32
    return %c0_i32, %c0_i32_0 : i32, i32
  }
  func.func @transform_2(%arg0: i32, %arg1: i32) -> (i32, i32) {
    %c0_i32 = arith.constant 0 : i32
    %c0_i32_0 = arith.constant 0 : i32
    %c0_i32_1 = arith.constant 0 : i32
    return %c0_i32, %c0_i32_0 : i32, i32
  }
  func.func @transform_3(%arg0: i32, %arg1: i32) -> (i32, i32) {
    %c0_i32 = arith.constant 0 : i32
    %c0_i32_0 = arith.constant 0 : i32
    %c0_i32_1 = arith.constant 0 : i32
    return %c0_i32, %c0_i32_0 : i32, i32
  }
  func.func @transform_4(%arg0: i32, %arg1: i32) -> (i32, i32) {
    %c0_i32 = arith.constant 0 : i32
    %c0_i32_0 = arith.constant 0 : i32
    %c0_i32_1 = arith.constant 0 : i32
    return %c0_i32, %c0_i32_0 : i32, i32
  }
  func.func @transform_5(%arg0: i32, %arg1: i32) -> (i32, i32) {
    %c0_i32 = arith.constant 0 : i32
    %c0_i32_0 = arith.constant 0 : i32
    %c0_i32_1 = arith.constant 0 : i32
    return %c0_i32, %c0_i32_0 : i32, i32
  }
  func.func @transform_6(%arg0: i32, %arg1: i32) -> (i32, i32) {
    %c0_i32 = arith.constant 0 : i32
    %c0_i32_0 = arith.constant 0 : i32
    %c0_i32_1 = arith.constant 0 : i32
    return %c0_i32, %c0_i32_0 : i32, i32
  }
  func.func @transform_7(%arg0: i32, %arg1: i32) -> (i32, i32) {
    %c0_i32 = arith.constant 0 : i32
    %c0_i32_0 = arith.constant 0 : i32
    %c0_i32_1 = arith.constant 0 : i32
    return %c0_i32, %c0_i32_0 : i32, i32
  }
  func.func @transform_8(%arg0: i32, %arg1: i32) -> (i32, i32) {
    %c0_i32 = arith.constant 0 : i32
    %c0_i32_0 = arith.constant 0 : i32
    %c0_i32_1 = arith.constant 0 : i32
    return %c0_i32, %c0_i32_0 : i32, i32
  }
  func.func @transform_9(%arg0: i32, %arg1: i32) -> (i32, i32, i32) {
    %c0_i32 = arith.constant 0 : i32
    %c0_i32_0 = arith.constant 0 : i32
    return %arg0, %arg1, %c0_i32 : i32, i32, i32
  }
  func.func @transform_10(%arg0: i32, %arg1: i32) -> (i32, i32, i32) {
    %c0_i32 = arith.constant 0 : i32
    %c0_i32_0 = arith.constant 0 : i32
    return %arg0, %arg1, %c0_i32 : i32, i32, i32
  }
  func.func @transform_11(%arg0: i32, %arg1: i32) -> (i32, i32, i32) {
    %c0_i32 = arith.constant 0 : i32
    %c0_i32_0 = arith.constant 0 : i32
    return %arg0, %arg1, %c0_i32 : i32, i32, i32
  }
}

</mosaic_0001>

<bundles_post_ra>
// kernel: tpu_custom_call.1
= control target key start
LH: loop header
LB: loop body
LE: loop exit
PB: predicated region body
PF: predicated region fallthrough
CT: control target
= control target key end

     0   :  { %s1564_s17 = smov 0   ;;  %s1566_s18 = smov 0   ;;  %s1799_s0 = inlined_call_operand.vmem [shape: f32[2,64,32], index: 0, kind: input, shape index: {}]   ;;  %s1800_s1 = inlined_call_operand.vmem [shape: f32[1,32], index: 1, kind: input, shape index: {}]   ;;  %s1801_s2 = inlined_call_operand.vmem [shape: f32[1,32], index: 2, kind: input, shape index: {}]   ;;  %s1802_s3 = inlined_call_operand.vmem [shape: bf16[32,32], index: 3, kind: input, shape index: {}]   ;;  %s1803_s4 = inlined_call_operand.vmem [shape: f32[1,32], index: 4, kind: input, shape index: {}]   ;;  %s1804_s5 = inlined_call_operand.vmem [shape: bf16[32,32], index: 5, kind: input, shape index: {}]   ;;  %s1805_s6 = inlined_call_operand.vmem [shape: f32[1,32], index: 6, kind: input, shape index: {}]   ;;  %s1806_s7 = inlined_call_operand.vmem [shape: bf16[32,32], index: 7, kind: input, shape index: {}]   ;;  %s1807_s8 = inlined_call_operand.vmem [shape: f32[1,32], index: 8, kind: input, shape index: {}]   ;;  %s1808_s9 = inlined_call_operand.vmem [shape: bf16[2,64,32], index: 9, kind: output, shape index: {0}]   ;;  %s1809_s10 = inlined_call_operand.vmem [shape: bf16[2,64,32], index: 10, kind: output, shape index: {1}]   ;;  %s1810_s11 = inlined_call_operand.vmem [shape: bf16[2,64,32], index: 11, kind: output, shape index: {2}]  }
   0x1   :  { %s1568_s19 = smov 0  }
   0x2 LB: > { %s34_s20 = sadd.s32 1, %s1498_s18  ;;  %p1274_p0 = scmp.ge.s32.totalorder %s1502_s19, 1  ;;  %s1502_s19 = sphi %s1568_s19, %s22_s19   ;;  %s1498_s18 = sphi %s1566_s18, %s1812_s18   ;;  %s1494_s17 = sphi %s1564_s17, %s1811_s17  }
   0x3   : > { %p36_p1 = scmp.ge.s32.totalorder %s34_s20, 2  ;;  %p367_p2 = scmp.lt.s32.totalorder %s1502_s19, 3 }
   0x5   : > { %s1814_s20 = smov (%p36_p1, %s34_s20), 0  ;;  %p368_p3 = pnand %p1274_p0, %p367_p2 }
   0x6   : > { %p434_p4 = scmp.lt.s32.totalorder (!%p368_p3), %s1494_s17, 1  ;;  %vm484_vm0 = vcmask (!%p368_p3), 261120   ;;  %v1442_v56 = vld [vmem:[%s1802_s3] sm:$0xff] (!%p368_p3)   ;;  %v1443_v57 = vld [vmem:[%s1802_s3 + $0x8] sm:$0xff] (!%p368_p3)  }
   0x7   : > { %371 = sbr.rel (%p368_p3) target bundleno = 598 (0x256), region = 56  ;;  %1378 = vmatprep.subr.bf16.mxu0 (!%p368_p3), %v1442_v56  ;;  %1414 = vmatprep.subr.bf16.mxu1 (!%p368_p3), %v1442_v56  ;;  %v1645_v58 = vld [vmem:[%s1806_s7] sm:$0xff] (!%p368_p3)  }
   0x8   : > { %1379 = vmatpush3.bf16.msra.mxu0 (!%p368_p3), %v1442_v56  ;;  %1416 = vmatpush3.bf16.msra.mxu1 (!%p368_p3), %v1442_v56  ;;  %v1651_v59 = vld [vmem:[%s1804_s5] sm:$0xff] (!%p368_p3)  }
   0x9   : > { %1380 = vmatprep.subr.bf16.mxu0 (!%p368_p3), %v1443_v57  ;;  %1415 = vmatprep.subr.bf16.mxu1 (!%p368_p3), %v1443_v57 }
   0xc   : > { %1381 = vmatpush3.bf16.msra.mxu0 (!%p368_p3), %v1443_v57  ;;  %1417 = vmatpush3.bf16.msra.mxu1 (!%p368_p3), %v1443_v57 }
   0xd   : > { %1402 = vmatprep.subr.bf16.mxu0 (!%p368_p3), %v1645_v58  ;;  %1390 = vmatprep.subr.bf16.mxu1 (!%p368_p3), %v1651_v59 }
   0xe   : > { %s1816_s17 = smov (!%p434_p4, %s1494_s17), 1 }
   0xf   : > { %s1332_s21 = sshll.u32 %s1816_s17, 6  ;;  %s1716_s28 = sshll.u32 %s1816_s17, 5 }
  0x10   : > { %s441_s24 = scalar_lea.vmem %s1799_s0, %s1332_s21  ;;  %s1722_s12 = scalar_lea.vmem %s1808_s9, %s1716_s28 }
  0x11   : > { %v474_v0 = vld [vmem:[%s441_s24] sm:$0xff]  ;;  %v475_v2 = vld [vmem:[%s441_s24 + $0x8] sm:$0xff]  ;;  %v476_v8 = vld [vmem:[%s441_s24 + $0x10] sm:$0xff]  ;;  %s1744_s22 = scalar_lea.vmem %s1810_s11, %s1716_s28  ;;  %s1758_s25 = scalar_lea.vmem %s1809_s10, %s1716_s28 }
  0x12   : > { %v478_v1 = vld [vmem:[%s441_s24 + $0x20] sm:$0xff]  ;;  %v485_v3 = vsel %vm484_vm0, %v474_v0, 0.0  ;;  %v479_v5 = vld [vmem:[%s441_s24 + $0x28] sm:$0xff]  ;;  %v488_v6 = vsel %vm484_vm0, %v475_v2, 0.0  ;;  %v477_v9 = vld [vmem:[%s441_s24 + $0x18] sm:$0xff]  ;;  %v491_v10 = vsel %vm484_vm0, %v476_v8, 0.0 }
  0x13   : > { %v497_v4 = vsel %vm484_vm0, %v478_v1, 0.0  ;;  %486 = vadd.xlane.f32.xlu0 %v485_v3  ;;  %v500_v7 = vsel %vm484_vm0, %v479_v5, 0.0  ;;  %v494_v11 = vsel %vm484_vm0, %v477_v9, 0.0  ;;  %v480_v12 = vld [vmem:[%s441_s24 + $0x30] sm:$0xff]  ;;  %v481_v13 = vld [vmem:[%s441_s24 + $0x38] sm:$0xff] }
  0x14   : > { %498 = vadd.xlane.f32.xlu1 %v497_v4  ;;  %v503_v14 = vsel %vm484_vm0, %v480_v12, 0.0  ;;  %v506_v15 = vsel %vm484_vm0, %v481_v13, 0.0 }
  0x17   : > { %489 = vadd.xlane.f32.xlu0 %v488_v6 }
  0x18   : > { %501 = vadd.xlane.f32.xlu1 %v500_v7 }
  0x1b   : > { %492 = vadd.xlane.f32.xlu0 %v491_v10 }
  0x1c   : > { %495 = vadd.xlane.f32.xlu1 %v494_v11 }
  0x1f   : > { %504 = vadd.xlane.f32.xlu0 %v503_v14 }
  0x20   : > { %507 = vadd.xlane.f32.xlu1 %v506_v15 }
  0xa0   : > { %v487_v16 = vpop.xlane.xlu0 %486 }
  0xa1   : > { %v499_v17 = vpop.xlane.xlu1 %498  ;;  %v510_v18 = vmul.f32 0.03125, %v487_v16 }
  0xa2   : > { %v514_v19 = vmul.f32 0.03125, %v499_v17 }
  0xa3   : > { %v1596_v20 = vsub.f32 %v474_v0, %v510_v18 }
  0xa4   : > { %v1598_v21 = vsub.f32 %v478_v1, %v514_v19  ;;  %v490_v22 = vpop.xlane.xlu0 %489 }
  0xa5   : > { %v502_v23 = vpop.xlane.xlu1 %501  ;;  %v511_v24 = vmul.f32 0.03125, %v490_v22  ;;  %v526_v26 = vmul.f32 %v1596_v20, %v1596_v20 }
  0xa6   : > { %v515_v25 = vmul.f32 0.03125, %v502_v23  ;;  %v530_v27 = vmul.f32 %v1598_v21, %v1598_v21 }
  0xa7   : > { %v1604_v28 = vsub.f32 %v475_v2, %v511_v24  ;;  %v534_v30 = vsel %vm484_vm0, %v526_v26, 0.0 }
  0xa8   : > { %v1606_v29 = vsub.f32 %v479_v5, %v515_v25  ;;  %v493_v31 = vpop.xlane.xlu0 %492  ;;  %535 = vadd.xlane.f32.xlu0 %v534_v30  ;;  %v546_v35 = vsel %vm484_vm0, %v530_v27, 0.0 }
  0xa9   : > { %v496_v32 = vpop.xlane.xlu1 %495  ;;  %v512_v33 = vmul.f32 0.03125, %v493_v31  ;;  %v527_v36 = vmul.f32 %v1604_v28, %v1604_v28 }
  0xaa   : > { %v513_v34 = vmul.f32 0.03125, %v496_v32  ;;  %v531_v37 = vmul.f32 %v1606_v29, %v1606_v29 }
  0xab   : > { %v1614_v38 = vsub.f32 %v476_v8, %v512_v33  ;;  %v537_v40 = vsel %vm484_vm0, %v527_v36, 0.0 }
  0xac   : > { %v1616_v39 = vsub.f32 %v477_v9, %v513_v34  ;;  %v505_v41 = vpop.xlane.xlu0 %504  ;;  %547 = vadd.xlane.f32.xlu0 %v546_v35  ;;  %538 = vadd.xlane.f32.xlu1 %v537_v40  ;;  %v549_v45 = vsel %vm484_vm0, %v531_v37, 0.0 }
  0xad   : > { %v508_v42 = vpop.xlane.xlu1 %507  ;;  %v516_v43 = vmul.f32 0.03125, %v505_v41  ;;  %v528_v46 = vmul.f32 %v1614_v38, %v1614_v38 }
  0xae   : > { %v517_v44 = vmul.f32 0.03125, %v508_v42  ;;  %v529_v47 = vmul.f32 %v1616_v39, %v1616_v39 }
  0xaf   : > { %v1624_v48 = vsub.f32 %v480_v12, %v516_v43  ;;  %v540_v50 = vsel %vm484_vm0, %v528_v46, 0.0 }
  0xb0   : > { %v1626_v49 = vsub.f32 %v481_v13, %v517_v44  ;;  %550 = vadd.xlane.f32.xlu1 %v549_v45  ;;  %541 = vadd.xlane.f32.xlu0 %v540_v50  ;;  %v543_v52 = vsel %vm484_vm0, %v529_v47, 0.0 }
  0xb1   : > { %v532_v51 = vmul.f32 %v1624_v48, %v1624_v48 }
  0xb2   : > { %v533_v53 = vmul.f32 %v1626_v49, %v1626_v49 }
  0xb3   : > { %v552_v54 = vsel %vm484_vm0, %v532_v51, 0.0 }
  0xb4   : > { %544 = vadd.xlane.f32.xlu1 %v543_v52  ;;  %553 = vadd.xlane.f32.xlu0 %v552_v54  ;;  %v555_v55 = vsel %vm484_vm0, %v533_v53, 0.0 }
  0xb8   : > { %556 = vadd.xlane.f32.xlu1 %v555_v55  ;;  %v1283_v55 = vld [vmem:[%s1800_s1] ss:$0 sm:$0xff] }
 0x135   : > { %v536_v60 = vpop.xlane.xlu0 %535 }
 0x136   : > { %v558_v61 = vmul.f32 0.032258064, %v536_v60 }
 0x138   : > { %1448 = vrsqrt.f32 %v558_v61  ;;  %vm582_vm1 = vcmp.eq.f32.partialorder %v558_v61, inf  ;;  %v585_v12 = vand.u32 2147483648, %v558_v61  ;;  %vm584_vm2 = vcmp.eq.f32.partialorder %v558_v61, 0.0 }
 0x139   : > { %v539_v62 = vpop.xlane.xlu1 %538  ;;  %v548_v63 = vpop.xlane.xlu0 %547 }
 0x13a   : > { %v559_v0 = vmul.f32 0.032258064, %v539_v62  ;;  %v562_v1 = vmul.f32 0.032258064, %v548_v63 }
 0x13c   : > { %1450 = vrsqrt.f32 %v559_v0  ;;  %vm589_vm3 = vcmp.eq.f32.partialorder %v559_v0, inf  ;;  %vm591_vm4 = vcmp.eq.f32.partialorder %v559_v0, 0.0  ;;  %v592_v23 = vand.u32 2147483648, %v559_v0 }
 0x13d   : > { %1452 = vrsqrt.f32 %v562_v1  ;;  %v551_v2 = vpop.xlane.xlu1 %550  ;;  %v542_v3 = vpop.xlane.xlu0 %541  ;;  %vm610_vm5 = vcmp.eq.f32.partialorder %v562_v1, inf  ;;  %v613_v26 = vand.u32 2147483648, %v562_v1  ;;  %vm612_vm6 = vcmp.eq.f32.partialorder %v562_v1, 0.0 }
 0x13e   : > { %v563_v4 = vmul.f32 0.032258064, %v551_v2  ;;  %v560_v5 = vmul.f32 0.032258064, %v542_v3  ;;  %v572_v3 = vmul.f32 %v1283_v55, %v1596_v20  ;;  %v1284_v20 = vld [vmem:[%s1801_s2] ss:$0 sm:$0xff] }
 0x140   : > { %1454 = vrsqrt.f32 %v563_v4  ;;  %vm617_vm7 = vcmp.eq.f32.partialorder %v563_v4, inf  ;;  %vm619_vm8 = vcmp.eq.f32.partialorder %v563_v4, 0.0  ;;  %v620_v36 = vand.u32 2147483648, %v563_v4 }
 0x141   : > { %1456 = vrsqrt.f32 %v560_v5  ;;  %v545_v6 = vpop.xlane.xlu1 %544  ;;  %v554_v7 = vpop.xlane.xlu0 %553  ;;  %vm596_vm9 = vcmp.eq.f32.partialorder %v560_v5, inf  ;;  %v599_v42 = vand.u32 2147483648, %v560_v5  ;;  %vm598_vm10 = vcmp.eq.f32.partialorder %v560_v5, 0.0 }
 0x142   : > { %v1449_v8 = vpop.eup %1448  ;;  %v1654_v9 = vmul.f32 0.032258064, %v545_v6  ;;  %v1656_v10 = vmul.f32 0.032258064, %v554_v7  ;;  %v573_v7 = vmul.f32 %v1283_v55, %v1604_v28 }
 0x143   : > { %v581_v11 = vmul.f32 %v1449_v8, %v558_v61 }
 0x144   : > { %1458 = vrsqrt.f32 %v1654_v9  ;;  %vm603_vm11 = vcmp.eq.f32.partialorder %v1654_v9, inf  ;;  %vm605_vm12 = vcmp.eq.f32.partialorder %v1654_v9, 0.0  ;;  %v606_v53 = vand.u32 2147483648, %v1654_v9 }
 0x145   : > { %v583_v13 = vsel %vm582_vm1, %v558_v61, %v581_v11  ;;  %1460 = vrsqrt.f32 %v1656_v10  ;;  %v557_v14 = vpop.xlane.xlu1 %556  ;;  %vm624_vm13 = vcmp.eq.f32.partialorder %v1656_v10, inf  ;;  %v627_v57 = vand.u32 2147483648, %v1656_v10 }
 0x146   : > { %v1451_v15 = vpop.eup %1450  ;;  %v1660_v16 = vmul.f32 0.032258064, %v557_v14  ;;  %v586_v17 = vsel %vm584_vm2, %v585_v12, %v583_v13  ;;  %vm626_vm14 = vcmp.eq.f32.partialorder %v1656_v10, 0.0  ;;  %v576_v13 = vmul.f32 %v1283_v55, %v1598_v21 }
 0x147   : > { %v1453_v18 = vpop.eup %1452  ;;  %v588_v19 = vmul.f32 %v1451_v15, %v559_v0  ;;  %v636_v22 = vadd.f32 1e-06, %v586_v17  ;;  %v577_v15 = vmul.f32 %v1283_v55, %v1606_v29  ;;  %v578_v29 = vmul.f32 %v1283_v55, %v1624_v48 }
 0x148   : > { %v609_v24 = vmul.f32 %v1453_v18, %v562_v1  ;;  %1462 = vrsqrt.f32 %v1660_v16  ;;  %vm631_vm15 = vcmp.eq.f32.partialorder %v1660_v16, inf  ;;  %vm633_vm1 = vcmp.eq.f32.partialorder %v1660_v16, 0.0 }
 0x149   : > { %v590_v25 = vsel %vm589_vm3, %v559_v0, %v588_v19  ;;  %1464 = vrcp.f32 %v636_v22  ;;  %v574_v22 = vmul.f32 %v1283_v55, %v1614_v38 }
 0x14a   : > { %v1455_v27 = vpop.eup %1454  ;;  %v611_v30 = vsel %vm610_vm5, %v562_v1, %v609_v24  ;;  %v593_v31 = vsel %vm591_vm4, %v592_v23, %v590_v25  ;;  %v575_v25 = vmul.f32 %v1283_v55, %v1616_v39 }
 0x14b   : > { %v1457_v32 = vpop.eup %1456  ;;  %v616_v33 = vmul.f32 %v1455_v27, %v563_v4  ;;  %v637_v34 = vadd.f32 1e-06, %v593_v31  ;;  %v614_v35 = vsel %vm612_vm6, %v613_v26, %v611_v30 }
 0x14c   : > { %v595_v37 = vmul.f32 %v1457_v32, %v560_v5  ;;  %v640_v40 = vadd.f32 1e-06, %v614_v35 }
 0x14d   : > { %v618_v41 = vsel %vm617_vm7, %v563_v4, %v616_v33  ;;  %1466 = vrcp.f32 %v637_v34  ;;  %v579_v34 = vmul.f32 %v1283_v55, %v1626_v49 }
 0x14e   : > { %v1459_v43 = vpop.eup %1458  ;;  %v597_v44 = vsel %vm596_vm9, %v560_v5, %v595_v37  ;;  %v621_v45 = vsel %vm619_vm8, %v620_v36, %v618_v41  ;;  %1468 = vrcp.f32 %v640_v40  ;;  %v634_v5 = vand.u32 2147483648, %v1660_v16  ;;  %v1446_v41 = vld [vmem:[%s1806_s7 + $0x8] sm:$0xff]  }
 0x14f   : > { %v1461_v46 = vpop.eup %1460  ;;  %v600_v47 = vsel %vm598_vm10, %v599_v42, %v597_v44  ;;  %v602_v50 = vmul.f32 %v1459_v43, %v1654_v9  ;;  %v641_v51 = vadd.f32 1e-06, %v621_v45  ;;  %v1447_v43 = vld [vmem:[%s1804_s5 + $0x8] sm:$0xff]  }
 0x150   : > { %v638_v52 = vadd.f32 1e-06, %v600_v47  ;;  %v623_v54 = vmul.f32 %v1461_v46, %v1656_v10 }
 0x151   : > { %v604_v56 = vsel %vm603_vm11, %v1654_v9, %v602_v50  ;;  %1470 = vrcp.f32 %v641_v51 }
 0x152   : > { %v1463_v60 = vpop.eup %1462  ;;  %1472 = vrcp.f32 %v638_v52  ;;  %v607_v61 = vsel %vm605_vm12, %v606_v53, %v604_v56  ;;  %v625_v62 = vsel %vm624_vm13, %v1656_v10, %v623_v54 }
 0x153   : > { %v1465_v63 = vpop.eup %1464  ;;  %v639_v0 = vadd.f32 1e-06, %v607_v61  ;;  %v628_v1 = vsel %vm626_vm14, %v627_v57, %v625_v62  ;;  %v630_v2 = vmul.f32 %v1463_v60, %v1660_v16 }
 0x154   : > { %v642_v4 = vadd.f32 1e-06, %v628_v1  ;;  %v645_v9 = vmul.f32 %v1465_v63, %v572_v3 }
 0x155   : > { %1474 = vrcp.f32 %v639_v0  ;;  %v632_v6 = vsel %vm631_vm15, %v1660_v16, %v630_v2 }
 0x156   : > { %1476 = vrcp.f32 %v642_v4  ;;  %v635_v8 = vsel %vm633_vm1, %v634_v5, %v632_v6  ;;  %v666_v17 = vadd.f32 %v1284_v20, %v645_v9  ;;  %v1299_v6 = vld [vmem:[%s1807_s8] ss:$0 sm:$0xff] }
 0x157   : > { %v1467_v10 = vpop.eup %1466  ;;  %v643_v11 = vadd.f32 1e-06, %v635_v8 }
 0x158   : > { %v1469_v12 = vpop.eup %1468  ;;  %v647_v14 = vmul.f32 %v1467_v10, %v573_v7 }
 0x159   : > { %1478 = vrcp.f32 %v643_v11  ;;  %v653_v18 = vmul.f32 %v1469_v12, %v576_v13 }
 0x15a   : > { %v667_v16 = vadd.f32 %v1284_v20, %v647_v14 }
 0x15b   : > { %v1471_v28 = vpop.eup %1470  ;;  %v670_v26 = vadd.f32 %v1284_v20, %v653_v18 }
 0x15c   : > { %v1473_v19 = vpop.eup %1472  ;;  %v674_v23 = vpack.c.bf16 %v667_v16, %v666_v17  ;;  %v655_v24 = vmul.f32 %v1471_v28, %v577_v15  ;;  %v1292_v17 = vld [vmem:[%s1805_s6] ss:$0 sm:$0xff] }
 0x15d   : > { %v649_v21 = vmul.f32 %v1473_v19, %v574_v22 }
 0x15e   : > { %1382 = vmatprep.mubr.msk.bf16.mxu0 %vm484_vm0, %v674_v23  ;;  %v671_v27 = vadd.f32 %v1284_v20, %v655_v24 }
 0x15f   : > { %v1475_v30 = vpop.eup %1474  ;;  %v668_v38 = vadd.f32 %v1284_v20, %v649_v21 }
 0x160   : > { %v1477_v31 = vpop.eup %1476  ;;  %v676_v32 = vpack.c.bf16 %v671_v27, %v670_v26  ;;  %v651_v33 = vmul.f32 %v1475_v30, %v575_v25 }
 0x161   : > { %v657_v36 = vmul.f32 %v1477_v31, %v578_v29 }
 0x162   : > { %1386 = vmatprep.mubr.msk.bf16.mxu1 %vm484_vm0, %v676_v32  ;;  %v669_v35 = vadd.f32 %v1284_v20, %v651_v33 }
 0x163   : > { %v1479_v37 = vpop.eup %1478  ;;  %v672_v42 = vadd.f32 %v1284_v20, %v657_v36 }
 0x164   : > { %v675_v39 = vpack.c.bf16 %v669_v35, %v668_v38  ;;  %v659_v40 = vmul.f32 %v1479_v37, %v579_v34 }
 0x166   : > { %1383 = vmatmul.mubr.msk.bf16.vlgmr.msra.gmra.mrb[0].mxu0 %vm484_vm0, %v675_v39  ;;  %v673_v48 = vadd.f32 %v1284_v20, %v659_v40 }
 0x167   : > { %1403 = vmatpush3.bf16.msra.mxu0 %v1645_v58  ;;  %1406 = vmatprep.mubr.msk.bf16.mxu0 %vm484_vm0, %v674_v23  ;;  %v1285_v58 = vld [vmem:[%s1803_s4] ss:$0 sm:$0xff] }
 0x168   : > { %v677_v49 = vpack.c.bf16 %v673_v48, %v672_v42  ;;  %1404 = vmatprep.subr.bf16.mxu0 %v1446_v41 }
 0x16a   : > { %1387 = vmatmul.mubr.msk.bf16.vlgmr.msra.gmra.mrb[0].mxu1 %vm484_vm0, %v677_v49 }
 0x16b   : > { %1391 = vmatpush3.bf16.msra.mxu1 %v1651_v59  ;;  %1394 = vmatprep.mubr.msk.bf16.mxu1 %vm484_vm0, %v674_v23 }
 0x16c   : > { %1405 = vmatpush3.bf16.msra.mxu0 %v1446_v41  ;;  %1392 = vmatprep.subr.bf16.mxu1 %v1447_v43 }
 0x16f   : > { %1393 = vmatpush3.bf16.msra.mxu1 %v1447_v43  ;;  %1407 = vmatmul.mubr.msk.bf16.vlgmr.msra.gmra.mrb[4].mxu0 %vm484_vm0, %v675_v39 }
 0x170   : > { %1410 = vmatprep.mubr.msk.bf16.mxu0 %vm484_vm0, %v676_v32 }
 0x172   : > { %1395 = vmatmul.mubr.msk.bf16.vlgmr.msra.gmra.mrb[4].mxu1 %vm484_vm0, %v675_v39 }
 0x173   : > { %1398 = vmatprep.mubr.msk.bf16.mxu1 %vm484_vm0, %v676_v32 }
 0x177   : > { %1411 = vmatmul.mubr.msk.bf16.gmra.mrb[8].mxu0 %vm484_vm0, %v677_v49 }
 0x17a   : > { %1399 = vmatmul.mubr.msk.bf16.gmra.mrb[8].mxu1 %vm484_vm0, %v677_v49  ;;  %vm994_vm0 = vcmask 257024  }
 0x239   : > { %v1384_v59 = vpop.f32.mrb[0].mxu0 }
 0x23a   : > { %v756_v44 = vadd.f32 %v1384_v59, %v1285_v58  ;;  %v747_v45 = vpop.f32.mrb[1].mxu0 }
 0x23b   : > { %v748_v46 = vadd.f32 %v1285_v58, %v747_v45  ;;  %v1385_v47 = vpop.f32.mrb[2].mxu0 }
 0x23c   : > { %v956_v50 = vmul.f32 0.35355338, %v756_v44  ;;  %v759_v51 = vadd.f32 %v1385_v47, %v1285_v58  ;;  %v750_v52 = vpop.f32.mrb[3].mxu0 }
 0x23d   : > { %v954_v53 = vmul.f32 0.35355338, %v748_v46  ;;  %v751_v54 = vadd.f32 %v1285_v58, %v750_v52  ;;  %v1388_v55 = vpop.f32.mrb[0].mxu1 }
 0x23e   : > { %v1338_v56 = vpack.c.bf16 %v956_v50, %v956_v50  ;;  %v957_v57 = vmul.f32 0.35355338, %v759_v51  ;;  %v772_v60 = vadd.f32 %v1388_v55, %v1285_v58  ;;  %v763_v61 = vpop.f32.mrb[1].mxu1 }
 0x23f   : > { %v1336_v62 = vpack.c.bf16 %v954_v53, %v954_v53  ;;  %v955_v63 = vmul.f32 0.35355338, %v751_v54  ;;  %v764_v0 = vadd.f32 %v1285_v58, %v763_v61  ;;  %v1389_v1 = vpop.f32.mrb[2].mxu1 }
 0x240   : > { %997 = vst.msk [vmem:[%s1722_s12 + $0x8] sm:$0xf] %vm994_vm0, %v1338_v56  ;;  %v1339_v2 = vpack.c.bf16 %v957_v57, %v957_v57  ;;  %v960_v3 = vmul.f32 0.35355338, %v772_v60  ;;  %v775_v4 = vadd.f32 %v1389_v1, %v1285_v58  ;;  %v766_v5 = vpop.f32.mrb[3].mxu1 }
 0x241   : > { %995 = vst.msk [vmem:[%s1722_s12] sm:$0xf] %vm994_vm0, %v1336_v62  ;;  %v1337_v7 = vpack.c.bf16 %v955_v63, %v955_v63  ;;  %v958_v8 = vmul.f32 0.35355338, %v764_v0  ;;  %v767_v9 = vadd.f32 %v1285_v58, %v766_v5 }
 0x242   : > { %998 = vst.msk [vmem:[%s1722_s12 + $0xc] sm:$0xf] %vm994_vm0, %v1339_v2  ;;  %v1342_v10 = vpack.c.bf16 %v960_v3, %v960_v3  ;;  %v961_v11 = vmul.f32 0.35355338, %v775_v4  ;;  %v1408_v20 = vpop.f32.mrb[4].mxu0 }
 0x243   : > { %996 = vst.msk [vmem:[%s1722_s12 + $0x4] sm:$0xf] %vm994_vm0, %v1337_v7  ;;  %v1340_v12 = vpack.c.bf16 %v958_v8, %v958_v8  ;;  %v959_v13 = vmul.f32 0.35355338, %v767_v9  ;;  %v932_v14 = vadd.f32 %v1408_v20, %v1299_v6  ;;  %v923_v15 = vpop.f32.mrb[5].mxu0 }
 0x244   : > { %1001 = vst.msk [vmem:[%s1722_s12 + $0x18] sm:$0xf] %vm994_vm0, %v1342_v10  ;;  %v1343_v16 = vpack.c.bf16 %v961_v11, %v961_v11  ;;  %v924_v18 = vadd.f32 %v1299_v6, %v923_v15  ;;  %v1409_v28 = vpop.f32.mrb[6].mxu0 }
 0x245   : > { %999 = vst.msk [vmem:[%s1722_s12 + $0x10] sm:$0xf] %vm994_vm0, %v1340_v12  ;;  %v1341_v19 = vpack.c.bf16 %v959_v13, %v959_v13  ;;  %v1354_v22 = vpack.c.bf16 %v932_v14, %v932_v14  ;;  %v935_v23 = vadd.f32 %v1409_v28, %v1299_v6  ;;  %v926_v24 = vpop.f32.mrb[7].mxu0  ;;  %v1396_v25 = vpop.f32.mrb[4].mxu1 }
 0x246   : > { %1002 = vst.msk [vmem:[%s1722_s12 + $0x1c] sm:$0xf] %vm994_vm0, %v1343_v16  ;;  %v1352_v26 = vpack.c.bf16 %v924_v18, %v924_v18  ;;  %v927_v27 = vadd.f32 %v1299_v6, %v926_v24  ;;  %v844_v21 = vadd.f32 %v1396_v25, %v1292_v17  ;;  %v835_v30 = vpop.f32.mrb[5].mxu1 }
 0x247   : > { %1000 = vst.msk [vmem:[%s1722_s12 + $0x14] sm:$0xf] %vm994_vm0, %v1341_v19  ;;  %1077 = vst.msk [vmem:[%s1744_s22 + $0x8] sm:$0xf] %vm994_vm0, %v1354_v22  ;;  %v1355_v31 = vpack.c.bf16 %v935_v23, %v935_v23  ;;  %v836_v29 = vadd.f32 %v1292_v17, %v835_v30  ;;  %v1397_v32 = vpop.f32.mrb[6].mxu1 }
 0x248   : > { %1075 = vst.msk [vmem:[%s1744_s22] sm:$0xf] %vm994_vm0, %v1352_v26  ;;  %v1353_v33 = vpack.c.bf16 %v927_v27, %v927_v27  ;;  %v1346_v34 = vpack.c.bf16 %v844_v21, %v844_v21  ;;  %v847_v38 = vadd.f32 %v1397_v32, %v1292_v17  ;;  %v838_v35 = vpop.f32.mrb[7].mxu1 }
 0x249   : > { %1078 = vst.msk [vmem:[%s1744_s22 + $0xc] sm:$0xf] %vm994_vm0, %v1355_v31  ;;  %v1344_v36 = vpack.c.bf16 %v836_v29, %v836_v29  ;;  %v839_v37 = vadd.f32 %v1292_v17, %v838_v35 }
 0x24a   : > { %1076 = vst.msk [vmem:[%s1744_s22 + $0x4] sm:$0xf] %vm994_vm0, %v1353_v33  ;;  %1037 = vst.msk [vmem:[%s1758_s25 + $0x8] sm:$0xf] %vm994_vm0, %v1346_v34  ;;  %v1347_v39 = vpack.c.bf16 %v847_v38, %v847_v38  ;;  %v1412_v40 = vpop.f32.mrb[8].mxu0 }
 0x24b   : > { %1035 = vst.msk [vmem:[%s1758_s25] sm:$0xf] %vm994_vm0, %v1344_v36  ;;  %v1345_v41 = vpack.c.bf16 %v839_v37, %v839_v37  ;;  %v948_v42 = vadd.f32 %v1412_v40, %v1299_v6  ;;  %v939_v48 = vpop.f32.mrb[9].mxu0 }
 0x24c   : > { %1038 = vst.msk [vmem:[%s1758_s25 + $0xc] sm:$0xf] %vm994_vm0, %v1347_v39  ;;  %v940_v49 = vadd.f32 %v1299_v6, %v939_v48  ;;  %v1413_v43 = vpop.f32.mrb[10].mxu0 }
 0x24d   : > { %1036 = vst.msk [vmem:[%s1758_s25 + $0x4] sm:$0xf] %vm994_vm0, %v1345_v41  ;;  %v1358_v58 = vpack.c.bf16 %v948_v42, %v948_v42  ;;  %v951_v59 = vadd.f32 %v1413_v43, %v1299_v6  ;;  %v942_v44 = vpop.f32.mrb[11].mxu0  ;;  %v1400_v45 = vpop.f32.mrb[8].mxu1 }
 0x24e   : > { %v1356_v46 = vpack.c.bf16 %v940_v49, %v940_v49  ;;  %v943_v47 = vadd.f32 %v1299_v6, %v942_v44  ;;  %v860_v50 = vadd.f32 %v1400_v45, %v1292_v17  ;;  %v851_v51 = vpop.f32.mrb[9].mxu1 }
 0x24f   : > { %1081 = vst.msk [vmem:[%s1744_s22 + $0x18] sm:$0xf] %vm994_vm0, %v1358_v58  ;;  %v1359_v52 = vpack.c.bf16 %v951_v59, %v951_v59  ;;  %v852_v53 = vadd.f32 %v1292_v17, %v851_v51  ;;  %v1401_v54 = vpop.f32.mrb[10].mxu1 }
 0x250   : > { %1079 = vst.msk [vmem:[%s1744_s22 + $0x10] sm:$0xf] %vm994_vm0, %v1356_v46  ;;  %v1357_v55 = vpack.c.bf16 %v943_v47, %v943_v47  ;;  %v1350_v56 = vpack.c.bf16 %v860_v50, %v860_v50  ;;  %v863_v57 = vadd.f32 %v1401_v54, %v1292_v17  ;;  %v854_v60 = vpop.f32.mrb[11].mxu1 }
 0x251   : > { %1082 = vst.msk [vmem:[%s1744_s22 + $0x1c] sm:$0xf] %vm994_vm0, %v1359_v52  ;;  %v1348_v61 = vpack.c.bf16 %v852_v53, %v852_v53  ;;  %v855_v62 = vadd.f32 %v1292_v17, %v854_v60 }
 0x252   : > { %1080 = vst.msk [vmem:[%s1744_s22 + $0x14] sm:$0xf] %vm994_vm0, %v1357_v55  ;;  %1041 = vst.msk [vmem:[%s1758_s25 + $0x18] sm:$0xf] %vm994_vm0, %v1350_v56  ;;  %v1351_v63 = vpack.c.bf16 %v863_v57, %v863_v57 }
 0x253   : > { %1039 = vst.msk [vmem:[%s1758_s25 + $0x10] sm:$0xf] %vm994_vm0, %v1348_v61  ;;  %v1349_v0 = vpack.c.bf16 %v855_v62, %v855_v62 }
 0x254   : > { %1042 = vst.msk [vmem:[%s1758_s25 + $0x1c] sm:$0xf] %vm994_vm0, %v1351_v63 }
 0x255   : > { %1040 = vst.msk [vmem:[%s1758_s25 + $0x14] sm:$0xf] %vm994_vm0, %v1349_v0 }
 0x256 PF: > { %s22_s19 = sadd.s32 1, %s1502_s19   ;;  %s1811_s17 = smov %s1498_s18 }
 0x257   : > { %p19_p5 = scmp.ge.s32.totalorder %s22_s19, 4   ;;  %s1812_s18 = smov %s1814_s20 }
 0x259   :  { %21 = sbr.rel (!%p19_p5) target bundleno = 2 (0x2), region = 110 }

</bundles_post_ra>
